<compile_context>
chip_gen: v7x
topology: tpu7x:2x2x1
jax: 0.10.0
libtpu: 0.0.40
codegen_flags: <defaults>
</compile_context>

<pallas_src>
import functools
import math

import numpy as np
import jax
import jax.numpy as jnp
from jax.experimental import pallas as pl
from jax.experimental.pallas import tpu as pltpu


# ----------------------------------------------------------------------------
# Relative-position sinusoid table (compact [2R+1, D] form; same values as the
# torch helper's embeddings_table).  The per-(query,key) embedding is recovered
# inside the attention kernel from the clipped distance, so the dense
# [S, S, D] tensor is never materialized.
# ----------------------------------------------------------------------------
def make_relative_position_table(depth, max_relative_position):
    vocab_size = 2 * max_relative_position + 1
    table = np.zeros([vocab_size, depth], dtype=np.float64)
    for pos in range(vocab_size):
        for i in range(depth // 2):
            table[pos, 2 * i] = np.sin(pos / np.power(10000, 2 * i / depth))
            table[pos, 2 * i + 1] = np.cos(pos / np.power(10000, 2 * i / depth))
    return jnp.asarray(table, dtype=jnp.bfloat16)


def _choose_tile(dim, target, align):
    """Largest tile <= target that divides dim (aligned); full dim if small."""
    if dim <= target:
        return dim
    t = target - (target % align)
    while t >= align:
        if dim % t == 0:
            return t
        t -= align
    return dim  # fall back to the full (untiled) dimension


# ----------------------------------------------------------------------------
# Pallas kernels
# ----------------------------------------------------------------------------
def matmul_bias_act_kernel(x_ref, w_ref, b_ref, o_ref, acc_ref, *, activation):
    # grid = (M/tm, N/tn, K/tk); K is the innermost ("arbitrary") reduction axis.
    @pl.when(pl.program_id(2) == 0)
    def _init():
        acc_ref[...] = jnp.zeros_like(acc_ref)

    acc_ref[...] += jnp.dot(x_ref[...], w_ref[...],
                            preferred_element_type=jnp.float32)

    @pl.when(pl.program_id(2) == pl.num_programs(2) - 1)
    def _finalize():
        y = acc_ref[...] + b_ref[...]
        if activation == "gelu":
            # TODO(synk): erf-based GELU (HF) vs tanh approximation (~1e-3 diff).
            c = math.sqrt(2.0 / math.pi)
            y = 0.5 * y * (1.0 + jnp.tanh(c * (y + 0.044715 * y * y * y)))
        o_ref[...] = y.astype(o_ref.dtype)


def residual_layernorm_kernel(x_ref, res_ref, g_ref, b_ref, o_ref, *, eps):
    # x (projection result) arrives in f32; residual is the bf16 hidden stream.
    y = x_ref[...] + res_ref[...].astype(jnp.float32)
    mu = jnp.mean(y, axis=-1, keepdims=True)
    var = jnp.mean(jnp.square(y - mu), axis=-1, keepdims=True)
    o_ref[...] = ((y - mu) * jax.lax.rsqrt(var + eps) * g_ref[...]
                  + b_ref[...]).astype(o_ref.dtype)


def nezha_attention_kernel(q_ref, k_ref, v_ref, table_ref, table_t_ref, mask_ref,
                           ctx_ref, scores_ref, *, scale, max_rel):
    # One (batch, head) pair per grid step.
    # TODO(synk): for long S, KV-tile this (flash-style online softmax) and build
    #             the distance one-hot per (q-tile, kv-tile) so it stays small.
    S, D = q_ref.shape
    V = table_ref.shape[0]

    q = q_ref[...]                 # (S, D) bf16
    k = k_ref[...]                 # (S, D) bf16
    v = v_ref[...]                 # (S, D) bf16
    table = table_ref[...]         # (V, D) bf16
    table_t = table_t_ref[...]     # (D, V) bf16
    mask = mask_ref[...]           # (1, S) f32, broadcasts over query rows

    # ---- content scores (MXU) ----
    s = jnp.dot(q, k.T, preferred_element_type=jnp.float32)           # (S, S)

    # ---- relative-key scores from the compact table (MXU) ----
    qtab = jnp.dot(q, table_t, preferred_element_type=jnp.float32)    # (S, V)
    # Distance one-hot built from iotas: zero HBM traffic, no [S,S,D] operand.
    f_idx = jax.lax.broadcasted_iota(jnp.int32, (S, S), 0)
    t_idx = jax.lax.broadcasted_iota(jnp.int32, (S, S), 1)
    dist = jnp.clip(t_idx - f_idx, -max_rel, max_rel) + max_rel        # (S, S)
    oh = (dist[:, :, None] ==
          jax.lax.broadcasted_iota(jnp.int32, (S, S, V), 2)).astype(jnp.bfloat16)
    # s_rel[f, t] = qtab[f, dist[f, t]]  (batched-over-f one-hot matmul, MXU)
    s_rel = jnp.einsum('bqd,bkd->bqk',
                       qtab.astype(jnp.bfloat16)[:, None, :], oh,
                       preferred_element_type=jnp.float32)[:, 0, :]    # (S, S)

    s = (s + s_rel) * scale + mask
    # layer_att (pre-softmax, scaled + masked).  Kept f32 because the encoder
    # returns it; emit bf16 here if consumers tolerate it (halves HBM writes).
    scores_ref[...] = s

    # ---- softmax in f32 ----
    m = jnp.max(s, axis=-1, keepdims=True)
    e = jnp.exp(s - m)
    p = e / jnp.sum(e, axis=-1, keepdims=True)
    p_bf = p.astype(jnp.bfloat16)

    # ---- context + relative-value contribution (MXU) ----
    ctx = jnp.dot(p_bf, v, preferred_element_type=jnp.float32)         # (S, D)
    # pbkt[f, v] = sum_t p[f, t] * [dist[f, t] == v]
    pbkt = jnp.einsum('bqk,bkd->bqd', p_bf[:, None, :], oh,
                      preferred_element_type=jnp.float32)[:, 0, :]     # (S, V)
    ctx = ctx + jnp.dot(pbkt.astype(jnp.bfloat16), table,
                        preferred_element_type=jnp.float32)            # (S, D)
    ctx_ref[...] = ctx.astype(ctx_ref.dtype)


# ----------------------------------------------------------------------------
# Pallas wrappers
# ----------------------------------------------------------------------------
def pallas_matmul_bias_act(x, w, b, *, activation=None, out_dtype=jnp.bfloat16,
                           tm=256, tn=512, tk=512):
    M, K = x.shape
    _, N = w.shape
    tm = _choose_tile(M, tm, 8)
    tn = _choose_tile(N, tn, 128)
    tk = _choose_tile(K, tk, 128)
    grid = (M // tm, N // tn, K // tk)
    kernel = functools.partial(matmul_bias_act_kernel, activation=activation)
    return pl.pallas_call(
        kernel,
        grid=grid,
        in_specs=[
            pl.BlockSpec((tm, tk), lambda i, j, k: (i, k)),
            pl.BlockSpec((tk, tn), lambda i, j, k: (k, j)),
            pl.BlockSpec((1, tn), lambda i, j, k: (0, j)),
        ],
        out_specs=pl.BlockSpec((tm, tn), lambda i, j, k: (i, j)),
        out_shape=jax.ShapeDtypeStruct((M, N), out_dtype),
        scratch_shapes=[pltpu.VMEM((tm, tn), jnp.float32)],
        compiler_params=pltpu.CompilerParams(
            dimension_semantics=("parallel", "parallel", "arbitrary")),
    )(x, w, b)


def pallas_residual_layernorm(x_f32, res_bf16, gamma, beta, *, eps=1e-12, tm=256):
    M, H = x_f32.shape
    tm = _choose_tile(M, tm, 8)
    kernel = functools.partial(residual_layernorm_kernel, eps=eps)
    return pl.pallas_call(
        kernel,
        grid=(M // tm,),
        in_specs=[
            pl.BlockSpec((tm, H), lambda i: (i, 0)),
            pl.BlockSpec((tm, H), lambda i: (i, 0)),
            pl.BlockSpec((1, H), lambda i: (0, 0)),
            pl.BlockSpec((1, H), lambda i: (0, 0)),
        ],
        out_specs=pl.BlockSpec((tm, H), lambda i: (i, 0)),
        out_shape=jax.ShapeDtypeStruct((M, H), jnp.bfloat16),
        compiler_params=pltpu.CompilerParams(dimension_semantics=("parallel",)),
    )(x_f32, res_bf16, gamma, beta)


def pallas_nezha_attention(q, k, v, table, table_t, mask_b1s, *, max_rel):
    B, nH, S, D = q.shape
    V = table.shape[0]
    kernel = functools.partial(nezha_attention_kernel,
                               scale=1.0 / math.sqrt(D), max_rel=max_rel)
    ctx, scores = pl.pallas_call(
        kernel,
        grid=(B, nH),
        in_specs=[
            pl.BlockSpec((None, None, S, D), lambda b, h: (b, h, 0, 0)),  # q
            pl.BlockSpec((None, None, S, D), lambda b, h: (b, h, 0, 0)),  # k
            pl.BlockSpec((None, None, S, D), lambda b, h: (b, h, 0, 0)),  # v
            pl.BlockSpec((V, D), lambda b, h: (0, 0)),                    # rel table
            pl.BlockSpec((D, V), lambda b, h: (0, 0)),                    # rel table^T
            pl.BlockSpec((None, 1, S), lambda b, h: (b, 0, 0)),           # additive mask
        ],
        out_specs=[
            pl.BlockSpec((None, None, S, D), lambda b, h: (b, h, 0, 0)),
            pl.BlockSpec((None, None, S, S), lambda b, h: (b, h, 0, 0)),
        ],
        out_shape=[
            jax.ShapeDtypeStruct((B, nH, S, D), jnp.bfloat16),
            jax.ShapeDtypeStruct((B, nH, S, S), jnp.float32),
        ],
        compiler_params=pltpu.CompilerParams(
            dimension_semantics=("parallel", "parallel")),
    )(q, k, v, table, table_t, mask_b1s)
    return ctx, scores


# ----------------------------------------------------------------------------
# NeZha encoder (parameters + per-layer forward built on the kernels above)
# ----------------------------------------------------------------------------
def init_layer_params(key, hidden, intermediate):
    ks = jax.random.split(key, 4)
    std = 0.02

    def w(k, shp):
        return (jax.random.normal(k, shp, jnp.float32) * std).astype(jnp.bfloat16)

    return {
        # fused Q/K/V projection: columns ordered [Q | K | V]
        "qkv_w": w(ks[0], (hidden, 3 * hidden)),
        "qkv_b": jnp.zeros((1, 3 * hidden), jnp.float32),
        "ao_w": w(ks[1], (hidden, hidden)),
        "ao_b": jnp.zeros((1, hidden), jnp.float32),
        "ao_g": jnp.ones((1, hidden), jnp.float32),
        "ao_be": jnp.zeros((1, hidden), jnp.float32),
        "i_w": w(ks[2], (hidden, intermediate)),
        "i_b": jnp.zeros((1, intermediate), jnp.float32),
        "o_w": w(ks[3], (intermediate, hidden)),
        "o_b": jnp.zeros((1, hidden), jnp.float32),
        "o_g": jnp.ones((1, hidden), jnp.float32),
        "o_be": jnp.zeros((1, hidden), jnp.float32),
    }


def nezha_layer_forward(p, h, mask_b1s, table, table_t, num_heads, max_rel):
    B, S, H = h.shape
    D = H // num_heads
    x2 = h.reshape(B * S, H)                                   # bf16 hidden stream

    # fused Q/K/V projection (one wide matmul)
    qkv = pallas_matmul_bias_act(x2, p["qkv_w"], p["qkv_b"],
                                 out_dtype=jnp.bfloat16)        # [B*S, 3H]
    # TODO(synk): layout-plumb qkv so the attention kernel reads it directly and
    #             this XLA transpose to [B, nH, S, D] disappears.
    qkv = qkv.reshape(B, S, 3, num_heads, D).transpose(2, 0, 3, 1, 4)
    q, k, v = qkv[0], qkv[1], qkv[2]                            # [B, nH, S, D]

    ctx, scores = pallas_nezha_attention(q, k, v, table, table_t, mask_b1s,
                                         max_rel=max_rel)
    ctx2 = ctx.transpose(0, 2, 1, 3).reshape(B * S, H)          # bf16

    # BertSelfOutput: dense + (dropout=identity) + LayerNorm(residual)
    proj = pallas_matmul_bias_act(ctx2, p["ao_w"], p["ao_b"],
                                  out_dtype=jnp.float32)
    attn_out = pallas_residual_layernorm(proj, x2, p["ao_g"], p["ao_be"])

    # BertIntermediate: dense + GELU
    inter = pallas_matmul_bias_act(attn_out, p["i_w"], p["i_b"],
                                   activation="gelu", out_dtype=jnp.bfloat16)
    # BertOutput: dense + (dropout=identity) + LayerNorm(residual)
    proj2 = pallas_matmul_bias_act(inter, p["o_w"], p["o_b"],
                                   out_dtype=jnp.float32)
    out = pallas_residual_layernorm(proj2, attn_out, p["o_g"], p["o_be"])

    return out.reshape(B, S, H), scores


def nezha_encoder_forward(params_list, hidden_states, attention_mask,
                          rel_table, num_heads, max_rel):
    B, S, H = hidden_states.shape
    # attention_mask: [B, 1, 1, S] additive mask -> compact [B, 1, S]
    mask_b1s = attention_mask.reshape(B, 1, S).astype(jnp.float32)
    table = rel_table                                           # [2R+1, D] bf16
    table_t = rel_table.T                                       # [D, 2R+1] bf16

    h = hidden_states.astype(jnp.bfloat16)
    all_encoder_layers = []
    all_encoder_att = []
    for p in params_list:
        all_encoder_layers.append(h)
        h, layer_att = nezha_layer_forward(p, h, mask_b1s, table, table_t,
                                           num_heads, max_rel)
        all_encoder_att.append(layer_att)
    all_encoder_layers.append(h)
    return all_encoder_layers, all_encoder_att


# ----------------------------------------------------------------------------
# main
# ----------------------------------------------------------------------------
if __name__ == "__main__":
    # small config
    batch = 2
    seq = 8
    hidden = 32
    num_heads = 4
    head_dim = hidden // num_heads
    intermediate = 64
    num_layers = 2
    max_relative_position = 64

    key = jax.random.PRNGKey(0)
    k_in, k_params = jax.random.split(key)

    hidden_states = jax.random.normal(k_in, (batch, seq, hidden), jnp.float32)

    # standard BERT additive attention mask [B, 1, 1, S]: 0 = attend, -10000 = masked
    pad = np.zeros((batch, seq), np.float32)
    pad[1, -2:] = 1.0  # mask last 2 tokens of batch item 1
    attention_mask = jnp.asarray((-10000.0 * pad)[:, None, None, :], jnp.float32)

    # compact [2R+1, D] sinusoid table (replaces the dense [512, 512, D] tensor)
    rel_table = make_relative_position_table(head_dim, max_relative_position)

    layer_keys = jax.random.split(k_params, num_layers)
    params_list = [init_layer_params(layer_keys[i], hidden, intermediate)
                   for i in range(num_layers)]

    all_layers, all_att = nezha_encoder_forward(
        params_list, hidden_states, attention_mask, rel_table,
        num_heads, max_relative_position)

    for a in all_layers:
        jax.block_until_ready(a)
    for a in all_att:
        jax.block_until_ready(a)

    assert all_layers[-1].shape == (batch, seq, hidden)
    assert all_att[-1].shape == (batch, num_heads, seq, seq)
    assert len(all_layers) == num_layers + 1 and len(all_att) == num_layers
    print("KERNEL_OK")
</pallas_src>

<mosaic_0001>
module attributes {stable_mosaic.version = 11 : i64} {
  func.func @matmul_bias_act_kernel(%arg0: i32, %arg1: i32, %arg2: i32, %arg3: memref<16x32xbf16, #tpu.memory_space<vmem>>, %arg4: memref<32x96xbf16, #tpu.memory_space<vmem>>, %arg5: memref<1x96xf32, #tpu.memory_space<vmem>>, %arg6: memref<16x96xbf16, #tpu.memory_space<vmem>>, %arg7: memref<16x96xf32, #tpu.memory_space<vmem>>) attributes {dimension_semantics = [#tpu.dimension_semantics<parallel>, #tpu.dimension_semantics<parallel>, #tpu.dimension_semantics<arbitrary>], iteration_bounds = array<i64: 1, 1, 1>, scalar_prefetch = 0 : i64, scratch_operands = 1 : i64, tpu.core_type = #tpu.core_type<tc>, window_params = [{transform_indices = @transform_0, window_bounds = array<i64: 16, 32>}, {transform_indices = @transform_1, window_bounds = array<i64: 32, 96>}, {transform_indices = @transform_2, window_bounds = array<i64: 1, 96>}, {transform_indices = @transform_3, window_bounds = array<i64: 16, 96>}]} {
    %c0_i32 = arith.constant 0 : i32
    %0 = arith.cmpi eq, %arg2, %c0_i32 : i32
    %1 = arith.extui %0 : i1 to i32
    %c0_i32_0 = arith.constant 0 : i32
    %2 = arith.cmpi ne, %1, %c0_i32_0 : i32
    scf.if %2 {
      %cst_10 = arith.constant 0.000000e+00 : f32
      %12 = vector.broadcast %cst_10 : f32 to vector<16x96xf32>
      %c0_11 = arith.constant 0 : index
      %c0_12 = arith.constant 0 : index
      %13 = vector.load %arg7[%c0_11, %c0_12] : memref<16x96xf32, #tpu.memory_space<vmem>>, vector<16x96xf32>
      tpu.vector_store %arg7[%c0_11, %c0_12], %12 {strides = array<i32>} : memref<16x96xf32, #tpu.memory_space<vmem>>, vector<16x96xf32>,
    } else {
    }
    %c0 = arith.constant 0 : index
    %c0_1 = arith.constant 0 : index
    %3 = vector.load %arg7[%c0, %c0_1] : memref<16x96xf32, #tpu.memory_space<vmem>>, vector<16x96xf32>
    %c0_2 = arith.constant 0 : index
    %c0_3 = arith.constant 0 : index
    %4 = vector.load %arg3[%c0_2, %c0_3] : memref<16x32xbf16, #tpu.memory_space<vmem>>, vector<16x32xbf16>
    %c0_4 = arith.constant 0 : index
    %c0_5 = arith.constant 0 : index
    %5 = vector.load %arg4[%c0_4, %c0_5] : memref<32x96xbf16, #tpu.memory_space<vmem>>, vector<32x96xbf16>
    %cst = arith.constant dense<0.000000e+00> : vector<16x96xf32>
    %6 = tpu.matmul %4, %5, %cst {dimension_numbers = #tpu.dot_dimension_numbers<[1], [0], [0], [1], [0, 0, 1, 1], [], []>} : vector<16x32xbf16>, vector<32x96xbf16>, vector<16x96xf32> -> vector<16x96xf32>
    %7 = arith.addf %3, %6 : vector<16x96xf32>
    %c0_6 = arith.constant 0 : index
    %c0_7 = arith.constant 0 : index
    %8 = vector.load %arg7[%c0_6, %c0_7] : memref<16x96xf32, #tpu.memory_space<vmem>>, vector<16x96xf32>
    tpu.vector_store %arg7[%c0_6, %c0_7], %7 {strides = array<i32>} : memref<16x96xf32, #tpu.memory_space<vmem>>, vector<16x96xf32>,
    %c0_i32_8 = arith.constant 0 : i32
    %9 = arith.cmpi eq, %arg2, %c0_i32_8 : i32
    %10 = arith.extui %9 : i1 to i32
    %c0_i32_9 = arith.constant 0 : i32
    %11 = arith.cmpi ne, %10, %c0_i32_9 : i32
    scf.if %11 {
      %c0_10 = arith.constant 0 : index
      %c0_11 = arith.constant 0 : index
      %12 = vector.load %arg7[%c0_10, %c0_11] : memref<16x96xf32, #tpu.memory_space<vmem>>, vector<16x96xf32>
      %c0_12 = arith.constant 0 : index
      %c0_13 = arith.constant 0 : index
      %13 = vector.load %arg5[%c0_12, %c0_13] : memref<1x96xf32, #tpu.memory_space<vmem>>, vector<1x96xf32>
      %14 = vector.broadcast %13 : vector<1x96xf32> to vector<16x96xf32>
      %15 = arith.addf %12, %14 : vector<16x96xf32>
      %16 = arith.truncf %15 : vector<16x96xf32> to vector<16x96xbf16>
      %c0_14 = arith.constant 0 : index
      %c0_15 = arith.constant 0 : index
      %17 = vector.load %arg6[%c0_14, %c0_15] : memref<16x96xbf16, #tpu.memory_space<vmem>>, vector<16x96xbf16>
      tpu.vector_store %arg6[%c0_14, %c0_15], %16 {strides = array<i32>} : memref<16x96xbf16, #tpu.memory_space<vmem>>, vector<16x96xbf16>,
    } else {
    }
    return
  }
  func.func @transform_0(%arg0: i32, %arg1: i32, %arg2: i32) -> (i32, i32) {
    %c0_i32 = arith.constant 0 : i32
    return %arg0, %arg2 : i32, i32
  }
  func.func @transform_1(%arg0: i32, %arg1: i32, %arg2: i32) -> (i32, i32) {
    %c0_i32 = arith.constant 0 : i32
    return %arg2, %arg1 : i32, i32
  }
  func.func @transform_2(%arg0: i32, %arg1: i32, %arg2: i32) -> (i32, i32) {
    %c0_i32 = arith.constant 0 : i32
    %c0_i32_0 = arith.constant 0 : i32
    return %c0_i32, %arg1 : i32, i32
  }
  func.func @transform_3(%arg0: i32, %arg1: i32, %arg2: i32) -> (i32, i32) {
    %c0_i32 = arith.constant 0 : i32
    return %arg0, %arg1 : i32, i32
  }
}

</mosaic_0001>

<bundles_post_ra>
// kernel: tpu_custom_call.1
= control target key start
LH: loop header
LB: loop body
LE: loop exit
PB: predicated region body
PF: predicated region fallthrough
CT: control target
= control target key end

     0   :  { %8 = vsyncpa [#allocation4], 0  ;;  %s350_s0 = inlined_call_operand.hbm [shape: bf16[16,32], index: 0, kind: input, shape index: {}]   ;;  %s351_s1 = inlined_call_operand.hbm [shape: bf16[32,96], index: 1, kind: input, shape index: {}]   ;;  %s352_s2 = inlined_call_operand.vmem [shape: f32[1,96], index: 2, kind: input, shape index: {}]   ;;  %s353_s3 = inlined_call_operand.hbm [shape: bf16[16,96], index: 3, kind: output, shape index: {}]  }
   0x1   :  { %9 = vsyncpa [#allocation7], 0 }
   0x2   :  { %10 = vsyncpa [#allocation5], 0  ;;  %s271_s12 = smov [#allocation3]   ;;  %s199_s16 = scalar_lea.hbm %s350_s0, 128 }
   0x3   :  { %s16_s13 = sshll.u32 %s271_s12, 4  ;;  %p200_p0 = scmp.ne.s32.totalorder %s350_s0, %s199_s16  ;;  %s17_s13 = int_to_ptr.vmem [resolvable:$true] %s16_s13 }
   0x4   :  { %p203_p1 = scmp.lt.u32.totalorder %s199_s16, %s350_s0 }
   0x6   :  { %p205_p2 = pnand %p203_p1, %p200_p0 }
   0x8   :  { %208 = shalt.err (!%p205_p2)
}
   0x9   :  { %s209_s21 = scalar_lea.vmem %s17_s13, 128  ;;  %p214_p4 = scmp.lt.s32.totalorder %s17_s13, %s17_s13 }
   0xa   :  { %p210_p3 = scmp.ne.s32.totalorder %s17_s13, %s209_s21  ;;  %p215_p5 = scmp.lt.s32.totalorder %s209_s21, %s209_s21 }
   0xc   :  { %p216_p6 = por %p215_p5, %p214_p4 }
   0xe   :  { %p217_p7 = pnand %p216_p6, %p210_p3 }
  0x10   :  { %220 = shalt.err (!%p217_p7)
}
  0x11   :  { %s272_s22 = smov 64   ;;  %s273_s23 = smov 4  }
  0x12   :  { %22 = dma.hbm_to_vmem [thread:$0]  %s350_s0, 128, %s17_s13, [#allocation4], %s272_s22, %s272_s22, %s273_s23  }
  0x13   :  { %s274_s26 = smov [#allocation6]   ;;  %s221_s30 = scalar_lea.hbm %s351_s1, 256 }
  0x14   :  { %s28_s27 = sshll.u32 %s274_s26, 4  ;;  %p222_p8 = scmp.ne.s32.totalorder %s351_s1, %s221_s30  ;;  %s29_s27 = int_to_ptr.vmem [resolvable:$true] %s28_s27 }
  0x15   :  { %p225_p9 = scmp.lt.u32.totalorder %s221_s30, %s351_s1 }
  0x17   :  { %p227_p10 = pnand %p225_p9, %p222_p8 }
  0x19   :  { %230 = shalt.err (!%p227_p10)
}
  0x1a   :  { %s231_s8 = scalar_lea.vmem %s29_s27, 256  ;;  %p236_p12 = scmp.lt.s32.totalorder %s29_s27, %s29_s27 }
  0x1b   :  { %p232_p11 = scmp.ne.s32.totalorder %s29_s27, %s231_s8  ;;  %p237_p13 = scmp.lt.s32.totalorder %s231_s8, %s231_s8 }
  0x1d   :  { %p238_p0 = por %p237_p13, %p236_p12 }
  0x1f   :  { %p239_p1 = pnand %p238_p0, %p232_p11 }
  0x21   :  { %242 = shalt.err (!%p239_p1)
}
  0x22   :  { %34 = dma.hbm_to_vmem [thread:$0]  %s351_s1, 256, %s29_s27, [#allocation7], %s272_s22, %s272_s22, %s273_s23  }
  0x23   :  { %265 = dma.done.wait [#allocation4], 128  }
  0x24   :  { %266 = vsyncadd [#allocation4], 4294967168 }
  0x25   :  { %267 = dma.done.wait [#allocation7], 256  }
  0x26   :  { %268 = vsyncadd [#allocation7], 4294967040  ;;  %vm48_vm0 = vcmask 785408   ;;  %v275_v0 = vmov 0.0   ;;  %vm276_vm1 = vmmov 0   ;;  %v196_v1 = vld [vmem:[#allocation6] sm:$0xff]  }
  0x27   :  { %49 = vst.msk [vmem:[#allocation2] sm:$0xff] %vm48_vm0, %v275_v0  ;;  %50 = vst.msk [vmem:[#allocation2 + $0x8] sm:$0xff] %vm48_vm0, %v275_v0  ;;  %181 = vmatprep.subr.bf16.mxu0 %v275_v0  ;;  %185 = vmatprep.mubr.msk.bf16.mxu0 %vm276_vm1, %v275_v0  ;;  %v197_v2 = vld [vmem:[#allocation6 + $0x8] sm:$0xff]   ;;  %v198_v3 = vld [vmem:[#allocation3] sm:$0xff]   ;;  %vm76_vm2 = vcmask 261120   ;;  %vm148_vm3 = vcmask 781312  }
  0x28   :  { %182 = vmatpush3.bf16.msra.mxu0 %v196_v1  ;;  %v173_v12 = vld [vmem:[%s352_s2] ss:$0 sm:$0xff]  ;;  %s277_s11 = smov [#allocation8]  }
  0x29   :  { %183 = vmatprep.subr.bf16.mxu0 %v275_v0  ;;  %s156_s12 = sshll.u32 %s277_s11, 4  ;;  %s157_s12 = int_to_ptr.vmem [resolvable:$true] %s156_s12 }
  0x2a   :  { %s243_s13 = scalar_lea.vmem %s157_s12, 128  ;;  %p248_p3 = scmp.lt.s32.totalorder %s157_s12, %s157_s12 }
  0x2b   :  { %p244_p2 = scmp.ne.s32.totalorder %s157_s12, %s243_s13  ;;  %p249_p4 = scmp.lt.s32.totalorder %s243_s13, %s243_s13 }
  0x2c   :  { %184 = vmatpush3.bf16.msra.mxu0 %v197_v2 }
  0x2d   :  { %p250_p5 = por %p249_p4, %p248_p3 }
  0x2e   :  { %v51_v4 = vld [vmem:[#allocation2] sm:$0xff]  ;;  %v52_v6 = vld [vmem:[#allocation2 + $0x8] sm:$0xff] }
  0x2f   :  { %186 = vmatmul.mubr.msk.bf16.vlgmr.msra.gmra.mrb[0].mxu0 %vm76_vm2, %v198_v3  ;;  %p251_p6 = pnand %p250_p5, %p244_p2 }
 0x102   :  { %v114_v5 = vpop.f32.mrb[0].mxu0 }
 0x103   :  { %v121_v7 = vadd.f32 %v114_v5, %v51_v4  ;;  %v187_v8 = vpop.f32.mrb[1].mxu0 }
 0x104   :  { %v117_v9 = vpop.f32.mrb[2].mxu0 }
 0x105   :  { %124 = vst.msk [vmem:[#allocation2] sm:$0xff] %vm48_vm0, %v121_v7  ;;  %v122_v10 = vadd.f32 %v117_v9, %v52_v6  ;;  %v188_v11 = vpop.f32.mrb[3].mxu0 }
 0x107   :  { %125 = vst.msk [vmem:[#allocation2 + $0x8] sm:$0xff] %vm48_vm0, %v122_v10 }
 0x10c   :  { %v129_v13 = vld [vmem:[#allocation2] sm:$0xff] }
 0x10d   :  { %v138_v14 = vadd.f32 %v173_v12, %v129_v13 }
 0x10e   :  { %v130_v15 = vld [vmem:[#allocation2 + $0x8] sm:$0xff] }
 0x10f   :  { %v139_v16 = vadd.f32 %v173_v12, %v130_v15  ;;  %v176_v17 = vpack.c.bf16 %v138_v14, %v138_v14 }
 0x111   :  { %v177_v18 = vpack.c.bf16 %v139_v16, %v139_v16  ;;  %149 = vst.msk [vmem:[#allocation8] sm:$0xf] %vm148_vm3, %v176_v17 }
 0x113   :  { %150 = vst.msk [vmem:[#allocation8 + $0x4] sm:$0xf] %vm148_vm3, %v177_v18 }
 0x114   :  { %254 = shalt.err (!%p251_p6)
}
 0x115   :  { %s255_s15 = scalar_lea.hbm %s353_s3, 128 }
 0x116   :  { %p256_p7 = scmp.ne.s32.totalorder %s353_s3, %s255_s15  ;;  %p259_p8 = scmp.lt.u32.totalorder %s255_s15, %s353_s3 }
 0x118   :  { %p261_p9 = pnand %p259_p8, %p256_p7 }
 0x11a   :  { %264 = shalt.err (!%p261_p9)
}
 0x11b   :  { %162 = dma.vmem_to_hbm [thread:$0]  %s157_s12, 128, %s353_s3, [#allocation5], %s272_s22, %s272_s22, %s273_s23  }
 0x11c   :  { %269 = dma.done.wait [#allocation5], 128  }
 0x11d   :  { %270 = vsyncadd [#allocation5], 4294967168 }
 0x11e   :  { %166 = vsyncpa [#allocation4], 1 }
 0x11f   :  { %167 = vsyncpa [#allocation7], 1 }
 0x120   :  { %168 = vsyncpa [#allocation5], 1 }

</bundles_post_ra>
